<compile_context>
chip_gen: v7x
topology: tpu7x:2x2x1
jax: 0.10.0
libtpu: 0.0.40
codegen_flags: <defaults>
</compile_context>

<pallas_src>
import jax
import jax.numpy as jnp
from jax.experimental import pallas as pl
from jax.experimental.pallas import tpu as pltpu

_LANE = 128
_TARGET_BLOCK_ROWS = 2048          # (2048, 128) f32 = 1 MiB per tile
_MIN_ROWS_TO_SPLIT = 512           # below this a single block is cheapest
_MAX_SINGLE_BLOCK_ELEMS = 512 * 1024   # 2 MiB f32: single-block ceiling for the 1-D path

_PARAMS = pltpu.CompilerParams(dimension_semantics=("parallel",))


def _cone_kernel(beta_ref, x_ref, o_ref):
    """Elementwise 1 - |x - 1|**beta on one VMEM tile (works for any tile rank)."""
    beta = beta_ref[0]
    is0 = beta == 0.0
    is1 = beta == 1.0
    is2 = beta == 2.0

    @pl.when(is0)
    def _():
        # pow(a, 0) == 1 for every a (incl. 0**0), so the output is exactly 0.
        o_ref[...] = jnp.zeros_like(o_ref)

    @pl.when(is1)
    def _():
        x = x_ref[...].astype(jnp.float32)
        o_ref[...] = (1.0 - jnp.abs(x - 1.0)).astype(o_ref.dtype)

    @pl.when(is2)
    def _():
        x = x_ref[...].astype(jnp.float32)
        a = jnp.abs(x - 1.0)
        o_ref[...] = (1.0 - a * a).astype(o_ref.dtype)

    @pl.when(jnp.logical_not(is0 | is1 | is2))
    def _():
        x = x_ref[...].astype(jnp.float32)
        a = jnp.abs(x - 1.0)
        # pow(a, beta) = exp(beta * log(a)) with a >= 0:
        #   a == 0, beta > 0 : exp(-inf) = 0    (matches torch.pow)
        #   a == 0, beta < 0 : exp(+inf) = inf  (matches torch.pow)
        o_ref[...] = (1.0 - jnp.exp(beta * jnp.log(a))).astype(o_ref.dtype)


def _cost(total_elems: int, itemsize: int) -> pl.CostEstimate:
    return pl.CostEstimate(
        flops=5 * total_elems,
        transcendentals=2 * total_elems,
        bytes_accessed=2 * total_elems * itemsize,
    )


def _choose_block_rows(rows: int) -> int:
    """Pick a sublane-aligned block height giving a balanced, >= 2-step grid."""
    if rows < _MIN_ROWS_TO_SPLIT:
        return rows                                  # single full-array block
    n_steps = max(2, pl.cdiv(rows, _TARGET_BLOCK_ROWS))
    if n_steps % 2:                                  # even step count: balanced on v7x's 2 TCs
        n_steps += 1
    block_rows = pl.cdiv(rows, n_steps)
    block_rows = ((block_rows + 7) // 8) * 8         # sublane-dim multiple of 8
    return min(block_rows, _TARGET_BLOCK_ROWS)


def _cone_2d(x2d: jax.Array, beta_arr: jax.Array) -> jax.Array:
    """Lane-dense (rows, 128) path (size % 128 == 0)."""
    rows, lane = x2d.shape
    block_rows = _choose_block_rows(rows)
    grid = (pl.cdiv(rows, block_rows),)
    return pl.pallas_call(
        _cone_kernel,
        out_shape=jax.ShapeDtypeStruct((rows, lane), x2d.dtype),
        grid=grid,
        in_specs=[
            pl.BlockSpec(memory_space=pltpu.SMEM),                # beta scalar
            pl.BlockSpec((block_rows, lane), lambda i: (i, 0)),   # x tile
        ],
        out_specs=pl.BlockSpec((block_rows, lane), lambda i: (i, 0)),
        compiler_params=_PARAMS,
        cost_estimate=_cost(rows * lane, x2d.dtype.itemsize),
    )(beta_arr, x2d)


def _cone_1d(x_flat: jax.Array, beta_arr: jax.Array) -> jax.Array:
    """Flat 1-D path for ragged sizes; the partial tail block is masked by Pallas."""
    (total,) = x_flat.shape
    if total <= _MAX_SINGLE_BLOCK_ELEMS:
        block_elems = total                           # full-array block (always legal)
    else:
        block_elems = _TARGET_BLOCK_ROWS * _LANE      # multiple of 8*128; ragged last block masked
    grid = (pl.cdiv(total, block_elems),)
    return pl.pallas_call(
        _cone_kernel,
        out_shape=jax.ShapeDtypeStruct((total,), x_flat.dtype),
        grid=grid,
        in_specs=[
            pl.BlockSpec(memory_space=pltpu.SMEM),            # beta scalar
            pl.BlockSpec((block_elems,), lambda i: (i,)),     # x chunk
        ],
        out_specs=pl.BlockSpec((block_elems,), lambda i: (i,)),
        compiler_params=_PARAMS,
        cost_estimate=_cost(total, x_flat.dtype.itemsize),
    )(beta_arr, x_flat)


def parameterized_cone(x: jax.Array, beta: jax.Array) -> jax.Array:
    """Elementwise 1 - |x - 1|**beta via a Pallas TPU kernel."""
    orig_shape = x.shape
    total = x.size
    if total == 0:
        return x

    beta_arr = jnp.reshape(beta, (1,)).astype(jnp.float32)
    x_flat = jnp.reshape(x, (-1,))

    if total % _LANE == 0:
        rows = total // _LANE
        out2d = _cone_2d(jnp.reshape(x_flat, (rows, _LANE)), beta_arr)
        return jnp.reshape(out2d, orig_shape)
    # Ragged size: single pallas_call over the flat array — no slice/concat copies.
    out_flat = _cone_1d(x_flat, beta_arr)
    return jnp.reshape(out_flat, orig_shape)


if __name__ == "__main__":
    key = jax.random.PRNGKey(0)

    # Case 1: default beta = 1.0 (module init), NCHW input, size % 128 == 0.
    beta = jnp.asarray(1.0, dtype=jnp.float32)
    x = jax.random.uniform(key, (2, 4, 16, 16), dtype=jnp.float32,
                           minval=0.0, maxval=2.0)
    y = jax.block_until_ready(parameterized_cone(x, beta))
    y_ref = 1.0 - jnp.power(jnp.abs(x - 1.0), beta)
    assert y.shape == x.shape and y.dtype == x.dtype
    assert jnp.allclose(y, y_ref, atol=1e-5, rtol=1e-5)

    # Case 2: non-integer beta, size % 128 != 0 (in-kernel ragged path, no wrapper copies).
    beta2 = jnp.asarray(2.5, dtype=jnp.float32)
    x2 = jax.random.uniform(jax.random.PRNGKey(1), (2, 3, 7, 5), dtype=jnp.float32,
                            minval=0.0, maxval=2.0)
    y2 = jax.block_until_ready(parameterized_cone(x2, beta2))
    y2_ref = 1.0 - jnp.power(jnp.abs(x2 - 1.0), beta2)
    assert y2.shape == x2.shape and y2.dtype == x2.dtype
    assert jnp.allclose(y2, y2_ref, atol=1e-5, rtol=1e-5)

    # Case 3: beta = 2.0 fast path and a multi-step grid (rows >= 512 -> 2 blocks).
    beta3 = jnp.asarray(2.0, dtype=jnp.float32)
    x3 = jax.random.uniform(jax.random.PRNGKey(2), (8, 8, 32, 32), dtype=jnp.float32,
                            minval=0.0, maxval=2.0)
    y3 = jax.block_until_ready(parameterized_cone(x3, beta3))
    y3_ref = 1.0 - jnp.power(jnp.abs(x3 - 1.0), beta3)
    assert jnp.allclose(y3, y3_ref, atol=1e-5, rtol=1e-5)

    # Case 4: beta = 0.0 (0**0 == 1 semantics -> output is exactly 0 everywhere).
    beta4 = jnp.asarray(0.0, dtype=jnp.float32)
    x4 = jnp.concatenate([jnp.zeros((1, 128), jnp.float32),
                          jnp.ones((1, 128), jnp.float32)])
    y4 = jax.block_until_ready(parameterized_cone(x4, beta4))
    assert jnp.allclose(y4, jnp.zeros_like(x4))

    print("KERNEL_OK")
</pallas_src>

<mosaic_0001>
module attributes {stable_mosaic.version = 11 : i64} {
  func.func @_cone_kernel(%arg0: i32, %arg1: memref<1xf32, #tpu.memory_space<smem>>, %arg2: memref<16x128xf32, #tpu.memory_space<vmem>>, %arg3: memref<16x128xf32, #tpu.memory_space<vmem>>) attributes {dimension_semantics = [#tpu.dimension_semantics<parallel>], iteration_bounds = array<i64: 1>, scalar_prefetch = 0 : i64, scratch_operands = 0 : i64, tpu.core_type = #tpu.core_type<tc>, window_params = [{transform_indices = @transform_0, window_bounds = array<i64: 1>}, {transform_indices = @transform_1, window_bounds = array<i64: 16, 128>}, {transform_indices = @transform_2, window_bounds = array<i64: 16, 128>}]} {
    %c0 = arith.constant 0 : index
    %0 = memref.load %arg1[%c0] : memref<1xf32, #tpu.memory_space<smem>>
    %cst = arith.constant 0.000000e+00 : f32
    %1 = arith.cmpf oeq, %0, %cst : f32
    %cst_0 = arith.constant 1.000000e+00 : f32
    %2 = arith.cmpf oeq, %0, %cst_0 : f32
    %cst_1 = arith.constant 2.000000e+00 : f32
    %3 = arith.cmpf oeq, %0, %cst_1 : f32
    %4 = arith.extui %1 : i1 to i32
    %c0_i32 = arith.constant 0 : i32
    %5 = arith.cmpi ne, %4, %c0_i32 : i32
    scf.if %5 {
      %cst_5 = arith.constant 0.000000e+00 : f32
      %15 = vector.broadcast %cst_5 : f32 to vector<16x128xf32>
      %c0_6 = arith.constant 0 : index
      %c0_7 = arith.constant 0 : index
      %16 = vector.load %arg3[%c0_6, %c0_7] : memref<16x128xf32, #tpu.memory_space<vmem>>, vector<16x128xf32>
      tpu.vector_store %arg3[%c0_6, %c0_7], %15 {strides = array<i32>} : memref<16x128xf32, #tpu.memory_space<vmem>>, vector<16x128xf32>,
    } else {
    }
    %6 = arith.extui %2 : i1 to i32
    %c0_i32_2 = arith.constant 0 : i32
    %7 = arith.cmpi ne, %6, %c0_i32_2 : i32
    scf.if %7 {
      %c0_5 = arith.constant 0 : index
      %c0_6 = arith.constant 0 : index
      %15 = vector.load %arg2[%c0_5, %c0_6] : memref<16x128xf32, #tpu.memory_space<vmem>>, vector<16x128xf32>
      %cst_7 = arith.constant 1.000000e+00 : f32
      %16 = vector.broadcast %cst_7 : f32 to vector<16x128xf32>
      %17 = arith.subf %15, %16 : vector<16x128xf32>
      %18 = math.absf %17 : vector<16x128xf32>
      %cst_8 = arith.constant 1.000000e+00 : f32
      %19 = vector.broadcast %cst_8 : f32 to vector<16x128xf32>
      %20 = arith.subf %19, %18 : vector<16x128xf32>
      %c0_9 = arith.constant 0 : index
      %c0_10 = arith.constant 0 : index
      %21 = vector.load %arg3[%c0_9, %c0_10] : memref<16x128xf32, #tpu.memory_space<vmem>>, vector<16x128xf32>
      tpu.vector_store %arg3[%c0_9, %c0_10], %20 {strides = array<i32>} : memref<16x128xf32, #tpu.memory_space<vmem>>, vector<16x128xf32>,
    } else {
    }
    %8 = arith.extui %3 : i1 to i32
    %c0_i32_3 = arith.constant 0 : i32
    %9 = arith.cmpi ne, %8, %c0_i32_3 : i32
    scf.if %9 {
      %c0_5 = arith.constant 0 : index
      %c0_6 = arith.constant 0 : index
      %15 = vector.load %arg2[%c0_5, %c0_6] : memref<16x128xf32, #tpu.memory_space<vmem>>, vector<16x128xf32>
      %cst_7 = arith.constant 1.000000e+00 : f32
      %16 = vector.broadcast %cst_7 : f32 to vector<16x128xf32>
      %17 = arith.subf %15, %16 : vector<16x128xf32>
      %18 = math.absf %17 : vector<16x128xf32>
      %19 = arith.mulf %18, %18 : vector<16x128xf32>
      %cst_8 = arith.constant 1.000000e+00 : f32
      %20 = vector.broadcast %cst_8 : f32 to vector<16x128xf32>
      %21 = arith.subf %20, %19 : vector<16x128xf32>
      %c0_9 = arith.constant 0 : index
      %c0_10 = arith.constant 0 : index
      %22 = vector.load %arg3[%c0_9, %c0_10] : memref<16x128xf32, #tpu.memory_space<vmem>>, vector<16x128xf32>
      tpu.vector_store %arg3[%c0_9, %c0_10], %21 {strides = array<i32>} : memref<16x128xf32, #tpu.memory_space<vmem>>, vector<16x128xf32>,
    } else {
    }
    %10 = arith.ori %1, %2 : i1
    %11 = arith.ori %10, %3 : i1
    %true = arith.constant true
    %12 = arith.xori %11, %true : i1
    %13 = arith.extui %12 : i1 to i32
    %c0_i32_4 = arith.constant 0 : i32
    %14 = arith.cmpi ne, %13, %c0_i32_4 : i32
    scf.if %14 {
      %c0_5 = arith.constant 0 : index
      %c0_6 = arith.constant 0 : index
      %15 = vector.load %arg2[%c0_5, %c0_6] : memref<16x128xf32, #tpu.memory_space<vmem>>, vector<16x128xf32>
      %cst_7 = arith.constant 1.000000e+00 : f32
      %16 = vector.broadcast %cst_7 : f32 to vector<16x128xf32>
      %17 = arith.subf %15, %16 : vector<16x128xf32>
      %18 = math.absf %17 : vector<16x128xf32>
      %19 = math.log %18 : vector<16x128xf32>
      %20 = vector.broadcast %0 : f32 to vector<16x128xf32>
      %21 = arith.mulf %20, %19 : vector<16x128xf32>
      %22 = math.exp %21 : vector<16x128xf32>
      %cst_8 = arith.constant 1.000000e+00 : f32
      %23 = vector.broadcast %cst_8 : f32 to vector<16x128xf32>
      %24 = arith.subf %23, %22 : vector<16x128xf32>
      %c0_9 = arith.constant 0 : index
      %c0_10 = arith.constant 0 : index
      %25 = vector.load %arg3[%c0_9, %c0_10] : memref<16x128xf32, #tpu.memory_space<vmem>>, vector<16x128xf32>
      tpu.vector_store %arg3[%c0_9, %c0_10], %24 {strides = array<i32>} : memref<16x128xf32, #tpu.memory_space<vmem>>, vector<16x128xf32>,
    } else {
    }
    return
  }
  func.func @transform_0(%arg0: i32) -> i32 {
    %c0_i32 = arith.constant 0 : i32
    %c0_i32_0 = arith.constant 0 : i32
    return %c0_i32 : i32
  }
  func.func @transform_1(%arg0: i32) -> (i32, i32) {
    %c0_i32 = arith.constant 0 : i32
    %c0_i32_0 = arith.constant 0 : i32
    return %arg0, %c0_i32 : i32, i32
  }
  func.func @transform_2(%arg0: i32) -> (i32, i32) {
    %c0_i32 = arith.constant 0 : i32
    %c0_i32_0 = arith.constant 0 : i32
    return %arg0, %c0_i32 : i32, i32
  }
}

</mosaic_0001>

<bundles_post_ra>
// kernel: tpu_custom_call.1
= control target key start
LH: loop header
LB: loop body
LE: loop exit
PB: predicated region body
PF: predicated region fallthrough
CT: control target
= control target key end

     0   :  { %8 = vsyncpa [#allocation4], 0  ;;  %s260_s0 = inlined_call_operand.<no memory space> [shape: f32[1], index: 0, kind: input, shape index: {}]   ;;  %s261_s1 = inlined_call_operand.hbm [shape: f32[16,128], index: 1, kind: input, shape index: {}]   ;;  %s262_s2 = inlined_call_operand.hbm [shape: f32[16,128], index: 2, kind: output, shape index: {}]  }
   0x1   :  { %9 = vsyncpa [#allocation5], 0  ;;  %s174_s9 = smov [#allocation3]   ;;  %s126_s13 = scalar_lea.hbm %s261_s1, 256 }
   0x2   :  { %s17_s10 = sshll.u32 %s174_s9, 4  ;;  %p127_p0 = scmp.ne.s32.totalorder %s261_s1, %s126_s13  ;;  %s18_s10 = int_to_ptr.vmem [resolvable:$true] %s17_s10 }
   0x3   :  { %p130_p1 = scmp.lt.u32.totalorder %s126_s13, %s261_s1 }
   0x5   :  { %p132_p2 = pnand %p130_p1, %p127_p0 }
   0x7   :  { %135 = shalt.err (!%p132_p2)
}
   0x8   :  { %s136_s18 = scalar_lea.vmem %s18_s10, 256  ;;  %p141_p4 = scmp.lt.s32.totalorder %s18_s10, %s18_s10 }
   0x9   :  { %p137_p3 = scmp.ne.s32.totalorder %s18_s10, %s136_s18  ;;  %p142_p5 = scmp.lt.s32.totalorder %s136_s18, %s136_s18 }
   0xb   :  { %p143_p6 = por %p142_p5, %p141_p4 }
   0xd   :  { %p144_p7 = pnand %p143_p6, %p137_p3 }
   0xf   :  { %147 = shalt.err (!%p144_p7)
}
  0x10   :  { %s175_s19 = smov 128   ;;  %s176_s20 = smov 8  }
  0x11   :  { %23 = dma.hbm_to_vmem [thread:$0]  %s261_s1, 256, %s18_s10, [#allocation4], %s175_s19, %s175_s19, %s176_s20  }
  0x12   :  { %170 = dma.done.wait [#allocation4], 256  }
  0x13   :  { %171 = vsyncadd [#allocation4], 4294967040  ;;  %p28_p8 = scmp.eq.f32.partialorder %s260_s0, 0.0  ;;  %p29_p9 = scmp.eq.f32.partialorder %s260_s0, 1.0 }
  0x14   :  { %p30_p10 = scmp.eq.f32.partialorder %s260_s0, 2.0  ;;  %v177_v0 = vmov (%p28_p8), 0.0  }
  0x15   :  { %33 = sbr.rel (!%p28_p8) target bundleno = 28 (0x1c), region = 17  ;;  %34 = vst [vmem:[#allocation6] sm:$0xff] (%p28_p8), %v177_v0  ;;  %35 = vst [vmem:[#allocation6 + $0x8] sm:$0xff] (%p28_p8), %v177_v0 }
  0x1c PF:  { %38 = sbr.rel (!%p29_p9) target bundleno = 36 (0x24), region = 21  ;;  %v39_v1 = vld [vmem:[#allocation3] sm:$0xff] (%p29_p9)  ;;  %v40_v2 = vld [vmem:[#allocation3 + $0x8] sm:$0xff] (%p29_p9) }
  0x1d   :  { %v107_v3 = vadd.f32 (%p29_p9), -1.0, %v39_v1  ;;  %v108_v4 = vadd.f32 (%p29_p9), -1.0, %v40_v2 }
  0x1f   :  { %v43_v5 = vand.u32 (%p29_p9), 2147483647, %v107_v3  ;;  %v44_v6 = vand.u32 (%p29_p9), 2147483647, %v108_v4 }
  0x21   :  { %v45_v7 = vsub.f32 (%p29_p9), 1.0, %v43_v5  ;;  %v46_v8 = vsub.f32 (%p29_p9), 1.0, %v44_v6 }
  0x23   :  { %47 = vst [vmem:[#allocation6] sm:$0xff] %v45_v7  ;;  %48 = vst [vmem:[#allocation6 + $0x8] sm:$0xff] %v46_v8 }
  0x24 PF:  { %51 = sbr.rel (!%p30_p10) target bundleno = 46 (0x2e), region = 25  ;;  %v52_v9 = vld [vmem:[#allocation3] sm:$0xff] (%p30_p10)  ;;  %v53_v10 = vld [vmem:[#allocation3 + $0x8] sm:$0xff] (%p30_p10) }
  0x25   :  { %v109_v11 = vadd.f32 (%p30_p10), -1.0, %v52_v9  ;;  %v110_v12 = vadd.f32 (%p30_p10), -1.0, %v53_v10 }
  0x27   :  { %v56_v13 = vand.u32 (%p30_p10), 2147483647, %v109_v11  ;;  %v57_v14 = vand.u32 (%p30_p10), 2147483647, %v110_v12 }
  0x29   :  { %v58_v15 = vmul.f32 (%p30_p10), %v56_v13, %v56_v13  ;;  %v59_v16 = vmul.f32 (%p30_p10), %v57_v14, %v57_v14 }
  0x2b   :  { %v60_v17 = vsub.f32 1.0, %v58_v15  ;;  %v61_v18 = vsub.f32 1.0, %v59_v16 }
  0x2d   :  { %62 = vst [vmem:[#allocation6] sm:$0xff] %v60_v17  ;;  %63 = vst [vmem:[#allocation6 + $0x8] sm:$0xff] %v61_v18 }
  0x2e PF:  { %p64_p11 = por %p29_p9, %p28_p8 }
  0x30   :  { %p65_p12 = por %p64_p11, %p30_p10 }
  0x31   :  { %v69_v19 = vld [vmem:[#allocation3] sm:$0xff] (!%p65_p12)  ;;  %v70_v20 = vld [vmem:[#allocation3 + $0x8] sm:$0xff] (!%p65_p12)  ;;  %v79_v26 = vstv (!%p65_p12), %s260_s0 }
  0x32   :  { %68 = sbr.rel (%p65_p12) target bundleno = 86 (0x56), region = 29  ;;  %v111_v21 = vadd.f32 (!%p65_p12), -1.0, %v69_v19  ;;  %v112_v22 = vadd.f32 (!%p65_p12), -1.0, %v70_v20 }
  0x34   :  { %v73_v23 = vand.u32 (!%p65_p12), 2147483647, %v111_v21  ;;  %v74_v24 = vand.u32 (!%p65_p12), 2147483647, %v112_v22 }
  0x36   :  { %118 = vlog2.f32 (!%p65_p12), %v73_v23 }
  0x37   :  { %120 = vlog2.f32 (!%p65_p12), %v74_v24 }
  0x40   :  { %v119_v25 = vpop.eup %118 }
  0x41   :  { %v121_v27 = vpop.eup %120  ;;  %v76_v28 = vmul.f32 0.6931472, %v119_v25 }
  0x42   :  { %v78_v29 = vmul.f32 0.6931472, %v121_v27 }
  0x43   :  { %v80_v30 = vmul.f32 %v79_v26, %v76_v28 }
  0x44   :  { %v81_v31 = vmul.f32 %v79_v26, %v78_v29 }
  0x45   :  { %v82_v32 = vmul.f32 1.442695, %v80_v30 }
  0x46   :  { %v84_v33 = vmul.f32 1.442695, %v81_v31 }
  0x47   :  { %122 = vpow2.f32 %v82_v32 }
  0x48   :  { %124 = vpow2.f32 %v84_v33 }
  0x51   :  { %v123_v34 = vpop.eup %122 }
  0x52   :  { %v125_v35 = vpop.eup %124  ;;  %v86_v36 = vsub.f32 1.0, %v123_v34 }
  0x53   :  { %v87_v37 = vsub.f32 1.0, %v125_v35 }
  0x54   :  { %88 = vst [vmem:[#allocation6] sm:$0xff] %v86_v36 }
  0x55   :  { %89 = vst [vmem:[#allocation6 + $0x8] sm:$0xff] %v87_v37 }
  0x56 PF:  { %s178_s14 = smov [#allocation6]  }
  0x57   :  { %s95_s15 = sshll.u32 %s178_s14, 4  ;;  %s96_s15 = int_to_ptr.vmem [resolvable:$true] %s95_s15 }
  0x58   :  { %s148_s0 = scalar_lea.vmem %s96_s15, 256  ;;  %p153_p0 = scmp.lt.s32.totalorder %s96_s15, %s96_s15 }
  0x59   :  { %p149_p13 = scmp.ne.s32.totalorder %s96_s15, %s148_s0  ;;  %p154_p1 = scmp.lt.s32.totalorder %s148_s0, %s148_s0 }
  0x5b   :  { %p155_p2 = por %p154_p1, %p153_p0 }
  0x5d   :  { %p156_p3 = pnand %p155_p2, %p149_p13 }
  0x5f   :  { %159 = shalt.err (!%p156_p3)
}
  0x60   :  { %s160_s18 = scalar_lea.hbm %s262_s2, 256 }
  0x61   :  { %p161_p4 = scmp.ne.s32.totalorder %s262_s2, %s160_s18  ;;  %p164_p5 = scmp.lt.u32.totalorder %s160_s18, %s262_s2 }
  0x63   :  { %p166_p6 = pnand %p164_p5, %p161_p4 }
  0x65   :  { %169 = shalt.err (!%p166_p6)
}
  0x66   :  { %101 = dma.vmem_to_hbm [thread:$0]  %s96_s15, 256, %s262_s2, [#allocation5], %s175_s19, %s175_s19, %s176_s20  }
  0x67   :  { %172 = dma.done.wait [#allocation5], 256  }
  0x68   :  { %173 = vsyncadd [#allocation5], 4294967040 }
  0x69   :  { %105 = vsyncpa [#allocation4], 1 }
  0x6a   :  { %106 = vsyncpa [#allocation5], 1 }

</bundles_post_ra>
